<compile_context>
chip_gen: v7x
topology: tpu7x:2x2x1
jax: 0.10.0
libtpu: 0.0.40
codegen_flags: <defaults>
</compile_context>

<pallas_src>
import math

import jax
import jax.numpy as jnp
from jax.experimental import pallas as pl
from jax.experimental.pallas import tpu as pltpu


def _round_up(x: int, m: int) -> int:
    return ((x + m - 1) // m) * m


def _pick_tile(total: int, target: int, quantum: int):
    """Pick a tile size <= target (multiple of quantum).  Prefers exact divisors of the
    quantum-rounded extent (avoids pad-then-slice copies); falls back to padding."""
    total_q = _round_up(max(total, 1), quantum)
    target = max(quantum, (min(target, total_q) // quantum) * quantum)
    chosen = None
    for cand in range(target, 0, -quantum):
        if total_q % cand == 0:
            chosen = cand
            break
    if chosen is not None and (chosen * 4 >= target or chosen == total_q):
        return chosen, total_q
    return target, _round_up(total, target)


# ---------------------------------------------------------------------------
# Pallas kernel 1a: per-channel sum / sum-of-squares over spatial positions
# (pass 1 of InstanceNorm2d).  x is channels-last (P, Cin); the inner grid axis is a
# sequential reduction ('arbitrary'); the outer axis splits the work across cores
# ('parallel') with per-core partial accumulators.
# ---------------------------------------------------------------------------
def _pair_stats_kernel(x_ref, sum_ref, sumsq_ref):
    @pl.when(pl.program_id(1) == 0)
    def _init():
        sum_ref[...] = jnp.zeros_like(sum_ref)
        sumsq_ref[...] = jnp.zeros_like(sumsq_ref)

    x = x_ref[...]                                             # (TILE_P, Cin) f32
    sum_ref[...] += jnp.sum(x, axis=0)[None, None, :]          # (1, 1, Cin)
    sumsq_ref[...] += jnp.sum(x * x, axis=0)[None, None, :]


# ---------------------------------------------------------------------------
# Pallas kernel 1b: folded normalize/affine + ELU (bf16) + 1x1 conv as a bf16 MXU
# matmul.  Channels-last in and out, so the store lands directly in NHWC layout.
# ---------------------------------------------------------------------------
def _pair_apply_kernel(x_ref, scale_ref, shift_ref, wt_ref, b_ref, o_ref):
    y = x_ref[...] * scale_ref[...] + shift_ref[...]           # (TILE_P, Cin) f32
    y = y.astype(jnp.bfloat16)                                 # bf16 ELU: halves VPU/EUP work
    # ELU(alpha=1): exp on the EUP; clamp so the dead branch never overflows.
    # (exp(min(y,0))-1 == expm1 up to rounding; matmul is bf16 anyway.)
    y = jnp.where(y > 0, y, jnp.exp(jnp.minimum(y, 0)) - 1)
    o_ref[...] = (
        jnp.dot(y, wt_ref[...], preferred_element_type=jnp.float32)   # (TILE_P, Cout)
        + b_ref[...]
    )


def pair_head(x, gamma, beta, w, b, *, tile_p=8192, eps=1e-5):
    """InstanceNorm2d(affine=True) + ELU + Conv2d(1x1) on a channels-last (P, Cin) map.

    Returns the conv output channels-last, shape (P, Cout), float32 (NHWC-ready)."""
    p, cin = x.shape
    cout = w.shape[0]

    # hoisted, done once (not per grid step)
    wt_bf16 = w.T.astype(jnp.bfloat16)                         # (Cin, Cout)
    b_row = b.reshape(1, cout).astype(jnp.float32)

    tile_p, p_pad = _pick_tile(p, tile_p, 8)
    num_tiles = p_pad // tile_p
    n_cores = 2 if num_tiles % 2 == 0 else 1                   # v7x: split stats across TCs
    tiles_per_core = num_tiles // n_cores
    if p_pad != p:
        # zero rows leave the sums unchanged (true count p is used for the mean)
        x = jnp.pad(x, ((0, p_pad - p), (0, 0)))

    # ---- pass 1: per-channel spatial statistics (tiled, per-core partials) --
    s, sq = pl.pallas_call(
        _pair_stats_kernel,
        out_shape=(
            jax.ShapeDtypeStruct((n_cores, 1, cin), jnp.float32),
            jax.ShapeDtypeStruct((n_cores, 1, cin), jnp.float32),
        ),
        grid=(n_cores, tiles_per_core),
        in_specs=[pl.BlockSpec((tile_p, cin),
                               lambda c, i: (c * tiles_per_core + i, 0))],
        out_specs=(
            pl.BlockSpec((1, 1, cin), lambda c, i: (c, 0, 0)),
            pl.BlockSpec((1, 1, cin), lambda c, i: (c, 0, 0)),
        ),
        compiler_params=pltpu.CompilerParams(
            dimension_semantics=("parallel", "arbitrary"),
            vmem_limit_bytes=32 * 1024 * 1024),
    )(x)
    s = jnp.sum(s, axis=0)[0]                                  # (Cin,)
    sq = jnp.sum(sq, axis=0)[0]

    mean = s / float(p)
    # NOTE: E[x^2]-E[x]^2 in f32 can cancel for large-mean channels; guard keeps it >= 0.
    var = jnp.maximum(sq / float(p) - mean * mean, 0.0)        # biased var (InstanceNorm2d)
    rstd = jax.lax.rsqrt(var + eps)
    scale = (gamma * rstd).reshape(1, cin)                     # fold norm + affine
    shift = (beta - mean * gamma * rstd).reshape(1, cin)

    # ---- pass 2: normalize + ELU + 1x1 conv (MXU), tiled, megacore-sharded ---
    out = pl.pallas_call(
        _pair_apply_kernel,
        out_shape=jax.ShapeDtypeStruct((p_pad, cout), jnp.float32),
        grid=(num_tiles,),
        in_specs=[
            pl.BlockSpec((tile_p, cin), lambda i: (i, 0)),     # streamed activations
            pl.BlockSpec((1, cin), lambda i: (0, 0)),          # resident small params
            pl.BlockSpec((1, cin), lambda i: (0, 0)),
            pl.BlockSpec((cin, cout), lambda i: (0, 0)),
            pl.BlockSpec((1, cout), lambda i: (0, 0)),
        ],
        out_specs=pl.BlockSpec((tile_p, cout), lambda i: (i, 0)),
        compiler_params=pltpu.CompilerParams(
            dimension_semantics=("parallel",),
            vmem_limit_bytes=32 * 1024 * 1024),
    )(x, scale, shift, wt_bf16, b_row)
    if p_pad != p:
        out = out[:p]
    return out


# ---------------------------------------------------------------------------
# Pallas kernel 2: token embedding (Embedding(5, dim)).  Tokens are grouped 8 per row;
# one-hot masks (VPU compares) x block-diagonal table (MXU, f32 => exact) produce
# (TILE_R, 8*dim=384) lane-dense output blocks; the (N/8, 384) output array is the
# (N, 48) NHWC embedding under a free reshape.
# ---------------------------------------------------------------------------
def _embed_kernel(tok_ref, wv_ref, o_ref):
    tok = tok_ref[...]                                         # (TILE_R, G) int32
    o_ref[...] = jnp.dot((tok == 0).astype(jnp.float32), wv_ref[0],
                         preferred_element_type=jnp.float32)
    for v in range(1, wv_ref.shape[0]):                        # V=5 -> 5 small MXU matmuls
        o_ref[...] += jnp.dot((tok == v).astype(jnp.float32), wv_ref[v],
                              preferred_element_type=jnp.float32)


def token_embedding(tokens_flat, table, *, tile_tokens=16384):
    n = tokens_flat.shape[0]
    nv, d = table.shape
    g = 128 // math.gcd(d, 128)                                # d=48 -> g=8 (384 lanes)
    nr = -(-n // g)
    tile_r, nr_pad = _pick_tile(nr, max(tile_tokens // g, 8), 8)
    num_tiles = nr_pad // tile_r

    toks = tokens_flat.astype(jnp.int32)
    if nr_pad * g != n:
        toks = jnp.pad(toks, (0, nr_pad * g - n))              # pad token 0 -> sliced off
    toks = toks.reshape(nr_pad, g)

    # block-diagonal gather weights: wv[v, j, j*d:(j+1)*d] = table[v]
    eye_g = jnp.eye(g, dtype=jnp.float32)
    wv = (eye_g[None, :, :, None] * table.astype(jnp.float32)[:, None, None, :]
          ).reshape(nv, g, g * d)

    out = pl.pallas_call(
        _embed_kernel,
        out_shape=jax.ShapeDtypeStruct((nr_pad, g * d), jnp.float32),
        grid=(num_tiles,),
        in_specs=[
            pl.BlockSpec((tile_r, g), lambda i: (i, 0)),
            pl.BlockSpec((nv, g, g * d), lambda i: (0, 0, 0)),  # 61 KB, stays resident
        ],
        out_specs=pl.BlockSpec((tile_r, g * d), lambda i: (i, 0)),
        compiler_params=pltpu.CompilerParams(
            dimension_semantics=("parallel",),
            vmem_limit_bytes=32 * 1024 * 1024),
    )(toks, wv)
    out = out.reshape(nr_pad * g, d)
    if nr_pad * g != n:
        out = out[:n]
    return out


# ---------------------------------------------------------------------------
# get_f2d preprocessing (the PyTorch code runs this under torch.no_grad()).
# Plain-JAX glue; now emits channels-LAST (L, L, 47) directly (no transpose).
# ---------------------------------------------------------------------------
def _reweight(msa1hot, cutoff):
    ncol = msa1hot.shape[1]
    id_min = ncol * cutoff
    id_mtx = jnp.einsum('ics,jcs->ij', msa1hot, msa1hot)
    id_mask = id_mtx > id_min
    return 1.0 / id_mask.sum(-1).astype(jnp.float32)


def _msa2pssm(msa1hot, w):
    beff = w.sum()
    f_i = (w[:, None, None] * msa1hot).sum(0) / beff + 1e-9
    h_i = (-f_i * jnp.log(f_i)).sum(1)
    return jnp.concatenate([f_i, h_i[:, None]], axis=1)


def _fast_dca(msa1hot, weights, penalty=4.5):
    nr, nc, ns = msa1hot.shape
    x = msa1hot.reshape(nr, nc * ns)
    num_points = weights.sum() - jnp.sqrt(weights.mean())
    mean = (x * weights[:, None]).sum(0, keepdims=True) / num_points
    x = (x - mean) * jnp.sqrt(weights[:, None])
    cov = x.T @ x / num_points
    cov_reg = cov + jnp.eye(nc * ns, dtype=x.dtype) * penalty / jnp.sqrt(weights.sum())
    # TODO(synk): torch.inverse has no Pallas primitive; computed with jnp.linalg.inv in glue.
    inv_cov = jnp.linalg.inv(cov_reg)
    x1 = inv_cov.reshape(nc, ns, nc, ns)
    x2 = x1.transpose(0, 2, 1, 3)
    features = x2.reshape(nc, nc, ns * ns)
    x3 = jnp.sqrt((x1[:, :-1, :, :-1] ** 2).sum((1, 3))) * (1 - jnp.eye(nc, dtype=x.dtype))
    apc = x3.sum(0, keepdims=True) * x3.sum(1, keepdims=True) / x3.sum()
    contacts = (x3 - apc) * (1 - jnp.eye(nc, dtype=x.dtype))
    return jnp.concatenate([features, contacts[:, :, None]], axis=2)


def get_f2d(msa, ss):
    """no_grad preprocessing; returns the pair features channels-last, (L, L, 47)."""
    nrow, ncol = msa.shape[-2:]
    if nrow == 1:
        msa = jnp.tile(msa.reshape(nrow, ncol), (2, 1))
        nrow = 2
    msa1hot = (jnp.arange(5) == msa[..., None]).astype(jnp.float32)   # (nrow, ncol, 5)
    w = _reweight(msa1hot, 0.8)
    f1d_seq = msa1hot[0, :, :4]
    f1d_pssm = _msa2pssm(msa1hot, w)
    f1d = jnp.concatenate([f1d_seq, f1d_pssm], axis=1)                # (ncol, 10)
    f2d_dca = _fast_dca(msa1hot, w)                                   # (ncol, ncol, 26)
    return jnp.concatenate([
        jnp.broadcast_to(f1d[:, None, :], (ncol, ncol, 10)),          # f1d of row i
        jnp.broadcast_to(f1d[None, :, :], (ncol, ncol, 10)),          # f1d of col j
        f2d_dca,
        ss.reshape(ncol, ncol, 1).astype(jnp.float32),
    ], axis=-1)                                                       # (L, L, 47)


# ---------------------------------------------------------------------------
# Module parameters + forward
# ---------------------------------------------------------------------------
def init_params(key, dim=48, in_dim=47):
    k1, k2, k3, k4, k5 = jax.random.split(key, 5)
    return {
        'in_gamma': 1.0 + 0.1 * jax.random.normal(k1, (in_dim,), jnp.float32),   # bn1.weight
        'in_beta': 0.1 * jax.random.normal(k2, (in_dim,), jnp.float32),          # bn1.bias
        'conv_w': jax.random.normal(k3, (dim, in_dim), jnp.float32) / jnp.sqrt(in_dim),  # conv1.weight[:,:,0,0]
        'conv_b': 0.1 * jax.random.normal(k4, (dim,), jnp.float32),              # conv1.bias
        'token_emb': jax.random.normal(k5, (5, dim), jnp.float32),               # token_emb.weight
    }


def input_embedder_forward(params, msa, ss, msa_cutoff=500):
    # msa: (B, nrow, ncol) int tokens in [0,5); ss: (1, ncol, ncol)
    f2d = get_f2d(msa[0], ss)                                  # (L, L, 47) channels-last
    L, _, cin = f2d.shape
    pair_flat = pair_head(f2d.reshape(L * L, cin),
                          params['in_gamma'], params['in_beta'],
                          params['conv_w'], params['conv_b'])  # (L*L, 48), NHWC layout
    pair = pair_flat.reshape(1, L, L, -1)                      # free reshape (no transpose)

    toks = msa[:, :msa_cutoff, :]
    b_, r_, c_ = toks.shape
    m = token_embedding(toks.reshape(-1), params['token_emb']).reshape(b_, r_, c_, -1)
    return {'pair': pair, 'msa': m}


# ---------------------------------------------------------------------------
# Plain-JAX f32 reference of the pair head (structural correctness check)
# ---------------------------------------------------------------------------
def _pair_head_reference(x, gamma, beta, w, b, eps=1e-5):
    mean = jnp.mean(x, axis=0, keepdims=True)
    var = jnp.mean((x - mean) ** 2, axis=0, keepdims=True)
    y = (x - mean) * jax.lax.rsqrt(var + eps) * gamma[None, :] + beta[None, :]
    y = jnp.where(y > 0, y, jnp.exp(jnp.minimum(y, 0.0)) - 1.0)
    return y @ w.T + b[None, :]


if __name__ == "__main__":
    key = jax.random.PRNGKey(0)
    kp, km, ks = jax.random.split(key, 3)

    B, nrow, L = 2, 4, 16          # small shapes; dim=48, in_dim=47 as in the module
    params = init_params(kp)
    msa = jax.random.randint(km, (B, nrow, L), 0, 5, dtype=jnp.int32)
    ss = (jax.random.uniform(ks, (1, L, L)) > 0.5).astype(jnp.float32)

    out = jax.block_until_ready(input_embedder_forward(params, msa, ss))

    assert out['pair'].shape == (1, L, L, 48), out['pair'].shape
    assert out['msa'].shape == (B, nrow, L, 48), out['msa'].shape
    assert bool(jnp.all(jnp.isfinite(out['pair']))) and bool(jnp.all(jnp.isfinite(out['msa'])))

    # cross-check against a plain-JAX f32 reference of the same forward pass
    f2d = get_f2d(msa[0], ss)
    cin = f2d.shape[-1]
    ref_pair = _pair_head_reference(f2d.reshape(L * L, cin),
                                    params['in_gamma'], params['in_beta'],
                                    params['conv_w'], params['conv_b']).reshape(1, L, L, -1)
    assert float(jnp.max(jnp.abs(out['pair'] - ref_pair))) < 0.15   # bf16 ELU/MXU tolerance

    ref_msa = params['token_emb'][msa[:, :500, :]]
    assert float(jnp.max(jnp.abs(out['msa'] - ref_msa))) < 1e-5     # f32 one-hot MXU: exact

    print("KERNEL_OK")
</pallas_src>

<mosaic_0001>
module attributes {stable_mosaic.version = 11 : i64} {
  func.func @_pair_stats_kernel(%arg0: i32, %arg1: i32, %arg2: memref<256x47xf32, #tpu.memory_space<vmem>>, %arg3: memref<1x1x47xf32, #tpu.memory_space<vmem>>, %arg4: memref<1x1x47xf32, #tpu.memory_space<vmem>>) attributes {dimension_semantics = [#tpu.dimension_semantics<parallel>, #tpu.dimension_semantics<arbitrary>], iteration_bounds = array<i64: 1, 1>, scalar_prefetch = 0 : i64, scratch_operands = 0 : i64, tpu.core_type = #tpu.core_type<tc>, window_params = [{transform_indices = @transform_0, window_bounds = array<i64: 256, 47>}, {transform_indices = @transform_1, window_bounds = array<i64: 1, 1, 47>}, {transform_indices = @transform_2, window_bounds = array<i64: 1, 1, 47>}]} {
    %c0_i32 = arith.constant 0 : i32
    %0 = arith.cmpi eq, %arg1, %c0_i32 : i32
    %1 = arith.extui %0 : i1 to i32
    %c0_i32_0 = arith.constant 0 : i32
    %2 = arith.cmpi ne, %1, %c0_i32_0 : i32
    scf.if %2 {
      %cst_15 = arith.constant 0.000000e+00 : f32
      %15 = vector.broadcast %cst_15 : f32 to vector<1x1x47xf32>
      %c0_16 = arith.constant 0 : index
      %c0_17 = arith.constant 0 : index
      %c0_18 = arith.constant 0 : index
      %16 = vector.load %arg3[%c0_16, %c0_17, %c0_18] : memref<1x1x47xf32, #tpu.memory_space<vmem>>, vector<1x1x47xf32>
      tpu.vector_store %arg3[%c0_16, %c0_17, %c0_18], %15 {strides = array<i32>} : memref<1x1x47xf32, #tpu.memory_space<vmem>>, vector<1x1x47xf32>,
      %cst_19 = arith.constant 0.000000e+00 : f32
      %17 = vector.broadcast %cst_19 : f32 to vector<1x1x47xf32>
      %c0_20 = arith.constant 0 : index
      %c0_21 = arith.constant 0 : index
      %c0_22 = arith.constant 0 : index
      %18 = vector.load %arg4[%c0_20, %c0_21, %c0_22] : memref<1x1x47xf32, #tpu.memory_space<vmem>>, vector<1x1x47xf32>
      tpu.vector_store %arg4[%c0_20, %c0_21, %c0_22], %17 {strides = array<i32>} : memref<1x1x47xf32, #tpu.memory_space<vmem>>, vector<1x1x47xf32>,
    } else {
    }
    %c0 = arith.constant 0 : index
    %c0_1 = arith.constant 0 : index
    %3 = vector.load %arg2[%c0, %c0_1] : memref<256x47xf32, #tpu.memory_space<vmem>>, vector<256x47xf32>
    %c0_2 = arith.constant 0 : index
    %c0_3 = arith.constant 0 : index
    %c0_4 = arith.constant 0 : index
    %4 = vector.load %arg3[%c0_2, %c0_3, %c0_4] : memref<1x1x47xf32, #tpu.memory_space<vmem>>, vector<1x1x47xf32>
    %cst = arith.constant dense<0.000000e+00> : vector<47xf32>
    %5 = vector.multi_reduction <add>, %3, %cst [0] : vector<256x47xf32> to vector<47xf32>
    %6 = vector.shape_cast %5 : vector<47xf32> to vector<1x1x47xf32>
    %7 = arith.addf %4, %6 : vector<1x1x47xf32>
    %c0_5 = arith.constant 0 : index
    %c0_6 = arith.constant 0 : index
    %c0_7 = arith.constant 0 : index
    %8 = vector.load %arg3[%c0_5, %c0_6, %c0_7] : memref<1x1x47xf32, #tpu.memory_space<vmem>>, vector<1x1x47xf32>
    tpu.vector_store %arg3[%c0_5, %c0_6, %c0_7], %7 {strides = array<i32>} : memref<1x1x47xf32, #tpu.memory_space<vmem>>, vector<1x1x47xf32>,
    %c0_8 = arith.constant 0 : index
    %c0_9 = arith.constant 0 : index
    %c0_10 = arith.constant 0 : index
    %9 = vector.load %arg4[%c0_8, %c0_9, %c0_10] : memref<1x1x47xf32, #tpu.memory_space<vmem>>, vector<1x1x47xf32>
    %10 = arith.mulf %3, %3 : vector<256x47xf32>
    %cst_11 = arith.constant dense<0.000000e+00> : vector<47xf32>
    %11 = vector.multi_reduction <add>, %10, %cst_11 [0] : vector<256x47xf32> to vector<47xf32>
    %12 = vector.shape_cast %11 : vector<47xf32> to vector<1x1x47xf32>
    %13 = arith.addf %9, %12 : vector<1x1x47xf32>
    %c0_12 = arith.constant 0 : index
    %c0_13 = arith.constant 0 : index
    %c0_14 = arith.constant 0 : index
    %14 = vector.load %arg4[%c0_12, %c0_13, %c0_14] : memref<1x1x47xf32, #tpu.memory_space<vmem>>, vector<1x1x47xf32>
    tpu.vector_store %arg4[%c0_12, %c0_13, %c0_14], %13 {strides = array<i32>} : memref<1x1x47xf32, #tpu.memory_space<vmem>>, vector<1x1x47xf32>,
    return
  }
  func.func @transform_0(%arg0: i32, %arg1: i32) -> (i32, i32) {
    %c1_i32 = arith.constant 1 : i32
    %0 = arith.muli %arg0, %c1_i32 : i32
    %1 = arith.addi %0, %arg1 : i32
    %c0_i32 = arith.constant 0 : i32
    %c0_i32_0 = arith.constant 0 : i32
    return %1, %c0_i32 : i32, i32
  }
  func.func @transform_1(%arg0: i32, %arg1: i32) -> (i32, i32, i32) {
    %c0_i32 = arith.constant 0 : i32
    %c0_i32_0 = arith.constant 0 : i32
    %c0_i32_1 = arith.constant 0 : i32
    return %arg0, %c0_i32, %c0_i32_0 : i32, i32, i32
  }
  func.func @transform_2(%arg0: i32, %arg1: i32) -> (i32, i32, i32) {
    %c0_i32 = arith.constant 0 : i32
    %c0_i32_0 = arith.constant 0 : i32
    %c0_i32_1 = arith.constant 0 : i32
    return %arg0, %c0_i32, %c0_i32_0 : i32, i32, i32
  }
}

</mosaic_0001>

<bundles_post_ra>
// kernel: tpu_custom_call.1
= control target key start
LH: loop header
LB: loop body
LE: loop exit
PB: predicated region body
PF: predicated region fallthrough
CT: control target
= control target key end

     0   :  { %8 = vsyncpa [#allocation3], 0  ;;  %vm38_vm0 = vcmask 376832   ;;  %vm74_vm1 = vcmask 384000   ;;  %v336_v3 = vmov 0.0   ;;  %s542_s0 = inlined_call_operand.vmem [shape: f32[256,47], index: 0, kind: input, shape index: {}]   ;;  %s543_s1 = inlined_call_operand.hbm [shape: f32[1,1,47], index: 1, kind: output, shape index: {0}]   ;;  %s544_s2 = inlined_call_operand.hbm [shape: f32[1,1,47], index: 2, kind: output, shape index: {1}]  }
   0x1   :  { %v41_v0 = vld [vmem:[%s542_s0] sm:$0xff]  ;;  %v42_v1 = vld [vmem:[%s542_s0 + $0x8] sm:$0xff]  ;;  %v43_v2 = vld [vmem:[%s542_s0 + $0x10] sm:$0xff]  ;;  %39 = vst.msk [vmem:[#allocation2] sm:$0x1] %vm38_vm0, %v336_v3 }
   0x2   :  { %40 = vst.msk [vmem:[#allocation4] sm:$0x1] %vm38_vm0, %v336_v3  ;;  %v75_v4 = vsel %vm74_vm1, %v41_v0, 0.0  ;;  %v76_v5 = vsel %vm74_vm1, %v42_v1, 0.0  ;;  %v78_v6 = vsel %vm74_vm1, %v43_v2, 0.0  ;;  %v44_v7 = vld [vmem:[%s542_s0 + $0x18] sm:$0xff] }
   0x3   :  { %v77_v8 = vadd.f32 %v76_v5, %v75_v4  ;;  %v80_v9 = vsel %vm74_vm1, %v44_v7, 0.0  ;;  %v45_v10 = vld [vmem:[%s542_s0 + $0x20] sm:$0xff]  ;;  %v46_v13 = vld [vmem:[%s542_s0 + $0x28] sm:$0xff]  ;;  %v47_v16 = vld [vmem:[%s542_s0 + $0x30] sm:$0xff] }
   0x4   :  { %v82_v12 = vsel %vm74_vm1, %v45_v10, 0.0  ;;  %v84_v15 = vsel %vm74_vm1, %v46_v13, 0.0  ;;  %v86_v18 = vsel %vm74_vm1, %v47_v16, 0.0  ;;  %v48_v19 = vld [vmem:[%s542_s0 + $0x38] sm:$0xff]  ;;  %v49_v22 = vld [vmem:[%s542_s0 + $0x40] sm:$0xff] }
   0x5   :  { %v79_v11 = vadd.f32 %v78_v6, %v77_v8  ;;  %v88_v21 = vsel %vm74_vm1, %v48_v19, 0.0 }
   0x7   :  { %v81_v14 = vadd.f32 %v80_v9, %v79_v11 }
   0x9   :  { %v83_v17 = vadd.f32 %v82_v12, %v81_v14 }
   0xb   :  { %v85_v20 = vadd.f32 %v84_v15, %v83_v17 }
   0xd   :  { %v87_v23 = vadd.f32 %v86_v18, %v85_v20 }
   0xe   :  { %9 = vsyncpa [#allocation5], 0  ;;  %v90_v24 = vsel %vm74_vm1, %v49_v22, 0.0  ;;  %v50_v25 = vld [vmem:[%s542_s0 + $0x48] sm:$0xff]  ;;  %v148_v28 = vmul.f32 %v41_v0, %v41_v0  ;;  %v149_v29 = vmul.f32 %v42_v1, %v42_v1  ;;  %v150_v30 = vmul.f32 %v43_v2, %v43_v2  ;;  %v51_v31 = vld [vmem:[%s542_s0 + $0x50] sm:$0xff] }
   0xf   :  { %v89_v26 = vadd.f32 %v88_v21, %v87_v23  ;;  %v92_v27 = vsel %vm74_vm1, %v50_v25, 0.0  ;;  %v52_v33 = vld [vmem:[%s542_s0 + $0x58] sm:$0xff]  ;;  %v94_v34 = vsel %vm74_vm1, %v51_v31, 0.0  ;;  %v151_v35 = vmul.f32 %v44_v7, %v44_v7  ;;  %v53_v42 = vld [vmem:[%s542_s0 + $0x60] sm:$0xff]  ;;  %v54_v48 = vld [vmem:[%s542_s0 + $0x68] sm:$0xff] }
  0x10   :  { %v96_v37 = vsel %vm74_vm1, %v52_v33, 0.0  ;;  %v152_v38 = vmul.f32 %v45_v10, %v45_v10  ;;  %v180_v39 = vsel %vm74_vm1, %v148_v28, 0.0  ;;  %v181_v40 = vsel %vm74_vm1, %v149_v29, 0.0  ;;  %v55_v54 = vld [vmem:[%s542_s0 + $0x70] sm:$0xff]  ;;  %v56_v60 = vld [vmem:[%s542_s0 + $0x78] sm:$0xff]  ;;  %v57_v2 = vld [vmem:[%s542_s0 + $0x80] sm:$0xff] }
  0x11   :  { %v91_v32 = vadd.f32 %v90_v24, %v89_v26  ;;  %v183_v41 = vsel %vm74_vm1, %v150_v30, 0.0  ;;  %v182_v44 = vadd.f32 %v181_v40, %v180_v39  ;;  %v98_v45 = vsel %vm74_vm1, %v53_v42, 0.0  ;;  %v58_v8 = vld [vmem:[%s542_s0 + $0x88] sm:$0xff]  ;;  %v59_v14 = vld [vmem:[%s542_s0 + $0x90] sm:$0xff]  ;;  %v60_v20 = vld [vmem:[%s542_s0 + $0x98] sm:$0xff] }
  0x12   :  { %v153_v46 = vmul.f32 %v46_v13, %v46_v13  ;;  %v185_v47 = vsel %vm74_vm1, %v151_v35, 0.0  ;;  %v100_v51 = vsel %vm74_vm1, %v54_v48, 0.0  ;;  %v154_v52 = vmul.f32 %v47_v16, %v47_v16  ;;  %v61_v26 = vld [vmem:[%s542_s0 + $0xa0] sm:$0xff] }
  0x13   :  { %v93_v36 = vadd.f32 %v92_v27, %v91_v32  ;;  %v184_v50 = vadd.f32 %v183_v41, %v182_v44  ;;  %v187_v53 = vsel %vm74_vm1, %v152_v38, 0.0  ;;  %v102_v57 = vsel %vm74_vm1, %v55_v54, 0.0  ;;  %v62_v32 = vld [vmem:[%s542_s0 + $0xa8] sm:$0xff]  ;;  %v63_v38 = vld [vmem:[%s542_s0 + $0xb0] sm:$0xff]  ;;  %v64_v44 = vld [vmem:[%s542_s0 + $0xb8] sm:$0xff] }
  0x14   :  { %v155_v58 = vmul.f32 %v48_v19, %v48_v19  ;;  %v189_v59 = vsel %vm74_vm1, %v153_v46, 0.0  ;;  %v104_v63 = vsel %vm74_vm1, %v56_v60, 0.0  ;;  %v156_v0 = vmul.f32 %v49_v22, %v49_v22 }
  0x15   :  { %v95_v43 = vadd.f32 %v94_v34, %v93_v36  ;;  %v186_v56 = vadd.f32 %v185_v47, %v184_v50  ;;  %v191_v1 = vsel %vm74_vm1, %v154_v52, 0.0  ;;  %v106_v5 = vsel %vm74_vm1, %v57_v2, 0.0  ;;  %v65_v50 = vld [vmem:[%s542_s0 + $0xc0] sm:$0xff] }
  0x16   :  { %v157_v6 = vmul.f32 %v50_v25, %v50_v25  ;;  %v193_v7 = vsel %vm74_vm1, %v155_v58, 0.0  ;;  %v108_v11 = vsel %vm74_vm1, %v58_v8, 0.0  ;;  %v158_v12 = vmul.f32 %v51_v31, %v51_v31 }
  0x17   :  { %v97_v49 = vadd.f32 %v96_v37, %v95_v43  ;;  %v188_v62 = vadd.f32 %v187_v53, %v186_v56  ;;  %v195_v13 = vsel %vm74_vm1, %v156_v0, 0.0  ;;  %v110_v17 = vsel %vm74_vm1, %v59_v14, 0.0  ;;  %v66_v56 = vld [vmem:[%s542_s0 + $0xc8] sm:$0xff] }
  0x18   :  { %v159_v18 = vmul.f32 %v52_v33, %v52_v33  ;;  %v197_v19 = vsel %vm74_vm1, %v157_v6, 0.0  ;;  %v112_v23 = vsel %vm74_vm1, %v60_v20, 0.0  ;;  %v160_v24 = vmul.f32 %v53_v42, %v53_v42 }
  0x19   :  { %v99_v55 = vadd.f32 %v98_v45, %v97_v49  ;;  %v190_v4 = vadd.f32 %v189_v59, %v188_v62  ;;  %v199_v25 = vsel %vm74_vm1, %v158_v12, 0.0  ;;  %v114_v29 = vsel %vm74_vm1, %v61_v26, 0.0  ;;  %v67_v62 = vld [vmem:[%s542_s0 + $0xd0] sm:$0xff] }
  0x1a   :  { %v161_v30 = vmul.f32 %v54_v48, %v54_v48  ;;  %v201_v31 = vsel %vm74_vm1, %v159_v18, 0.0  ;;  %v116_v35 = vsel %vm74_vm1, %v62_v32, 0.0  ;;  %v162_v36 = vmul.f32 %v55_v54, %v55_v54 }
  0x1b   :  { %v101_v61 = vadd.f32 %v100_v51, %v99_v55  ;;  %v192_v10 = vadd.f32 %v191_v1, %v190_v4  ;;  %v203_v37 = vsel %vm74_vm1, %v160_v24, 0.0  ;;  %v118_v41 = vsel %vm74_vm1, %v63_v38, 0.0  ;;  %v68_v4 = vld [vmem:[%s542_s0 + $0xd8] sm:$0xff] }
  0x1c   :  { %v163_v42 = vmul.f32 %v56_v60, %v56_v60  ;;  %v205_v43 = vsel %vm74_vm1, %v161_v30, 0.0  ;;  %v120_v47 = vsel %vm74_vm1, %v64_v44, 0.0  ;;  %v164_v48 = vmul.f32 %v57_v2, %v57_v2 }
  0x1d   :  { %v103_v3 = vadd.f32 %v102_v57, %v101_v61  ;;  %v194_v16 = vadd.f32 %v193_v7, %v192_v10  ;;  %v207_v49 = vsel %vm74_vm1, %v162_v36, 0.0  ;;  %v122_v53 = vsel %vm74_vm1, %v65_v50, 0.0  ;;  %v69_v10 = vld [vmem:[%s542_s0 + $0xe0] sm:$0xff] }
  0x1e   :  { %v165_v54 = vmul.f32 %v58_v8, %v58_v8  ;;  %v209_v55 = vsel %vm74_vm1, %v163_v42, 0.0  ;;  %v124_v59 = vsel %vm74_vm1, %v66_v56, 0.0  ;;  %v166_v60 = vmul.f32 %v59_v14, %v59_v14 }
  0x1f   :  { %v105_v9 = vadd.f32 %v104_v63, %v103_v3  ;;  %v196_v22 = vadd.f32 %v195_v13, %v194_v16  ;;  %v211_v61 = vsel %vm74_vm1, %v164_v48, 0.0  ;;  %v126_v1 = vsel %vm74_vm1, %v67_v62, 0.0  ;;  %v70_v16 = vld [vmem:[%s542_s0 + $0xe8] sm:$0xff] }
  0x20   :  { %v167_v2 = vmul.f32 %v60_v20, %v60_v20  ;;  %v213_v3 = vsel %vm74_vm1, %v165_v54, 0.0  ;;  %v128_v7 = vsel %vm74_vm1, %v68_v4, 0.0  ;;  %v168_v8 = vmul.f32 %v61_v26, %v61_v26 }
  0x21   :  { %v107_v15 = vadd.f32 %v106_v5, %v105_v9  ;;  %v198_v28 = vadd.f32 %v197_v19, %v196_v22  ;;  %v215_v9 = vsel %vm74_vm1, %v166_v60, 0.0  ;;  %v130_v13 = vsel %vm74_vm1, %v69_v10, 0.0  ;;  %v71_v22 = vld [vmem:[%s542_s0 + $0xf0] sm:$0xff]  ;;  %v73_v60 = vld [vmem:[#allocation2] sm:$0x1] }
  0x22   :  { %v169_v14 = vmul.f32 %v62_v32, %v62_v32  ;;  %v132_v19 = vsel %vm74_vm1, %v70_v16, 0.0  ;;  %v170_v20 = vmul.f32 %v63_v38, %v63_v38  ;;  %v171_v26 = vmul.f32 %v64_v44, %v64_v44 }
  0x23   :  { %v109_v21 = vadd.f32 %v108_v11, %v107_v15  ;;  %v200_v34 = vadd.f32 %v199_v25, %v198_v28  ;;  %v217_v15 = vsel %vm74_vm1, %v167_v2, 0.0  ;;  %v134_v25 = vsel %vm74_vm1, %v71_v22, 0.0  ;;  %v72_v28 = vld [vmem:[%s542_s0 + $0xf8] sm:$0xff]  ;;  %s337_s0 = smov [#allocation2]  }
  0x24   :  { %v172_v32 = vmul.f32 %v65_v50, %v65_v50  ;;  %v173_v36 = vmul.f32 %v66_v56, %v66_v56  ;;  %v175_v44 = vmul.f32 %v68_v4, %v68_v4  ;;  %v176_v48 = vmul.f32 %v69_v10, %v69_v10  ;;  %s257_s17 = sshll.u32 %s337_s0, 4  ;;  %s258_s17 = int_to_ptr.vmem [resolvable:$true] %s257_s17 }
  0x25   :  { %v111_v27 = vadd.f32 %v110_v17, %v109_v21  ;;  %v202_v40 = vadd.f32 %v201_v31, %v200_v34  ;;  %v219_v21 = vsel %vm74_vm1, %v168_v8, 0.0  ;;  %v136_v31 = vsel %vm74_vm1, %v72_v28, 0.0  ;;  %s288_s18 = scalar_lea.vmem %s258_s17, 16  ;;  %s292_s19 = scalar_lea.vmem %s258_s17, 32 }
  0x26   :  { %v178_v56 = vmul.f32 %v71_v22, %v71_v22  ;;  %p289_p0 = scmp.ne.s32.totalorder %s258_s17, %s288_s18  ;;  %p293_p1 = scmp.lt.s32.totalorder %s258_s17, %s258_s17 }
  0x27   :  { %v113_v33 = vadd.f32 %v112_v23, %v111_v27  ;;  %v204_v46 = vadd.f32 %v203_v37, %v202_v40  ;;  %v221_v27 = vsel %vm74_vm1, %v169_v14, 0.0  ;;  %v225_v37 = vsel %vm74_vm1, %v171_v26, 0.0  ;;  %p294_p2 = scmp.lt.s32.totalorder %s292_s19, %s288_s18 }
  0x28   :  { %v174_v40 = vmul.f32 %v67_v62, %v67_v62 }
  0x29   :  { %v115_v39 = vadd.f32 %v114_v29, %v113_v33  ;;  %v206_v52 = vadd.f32 %v205_v43, %v204_v46  ;;  %v223_v33 = vsel %vm74_vm1, %v170_v20, 0.0  ;;  %p295_p3 = por %p294_p2, %p293_p1 }
  0x2b   :  { %v117_v45 = vadd.f32 %v116_v35, %v115_v39  ;;  %v208_v58 = vadd.f32 %v207_v49, %v206_v52  ;;  %v231_v49 = vsel %vm74_vm1, %v174_v40, 0.0  ;;  %v177_v52 = vmul.f32 %v70_v16, %v70_v16  ;;  %p296_p4 = pnand %p295_p3, %p289_p0 }
  0x2d   :  { %v119_v51 = vadd.f32 %v118_v41, %v117_v45  ;;  %v210_v0 = vadd.f32 %v209_v55, %v208_v58  ;;  %v227_v41 = vsel %vm74_vm1, %v172_v32, 0.0  ;;  %v229_v45 = vsel %vm74_vm1, %v173_v36, 0.0 }
  0x2e   :  { %v237_v62 = vsel %vm74_vm1, %v177_v52, 0.0 }
  0x2f   :  { %v121_v57 = vadd.f32 %v120_v47, %v119_v51  ;;  %v212_v6 = vadd.f32 %v211_v61, %v210_v0  ;;  %v179_v61 = vmul.f32 %v72_v28, %v72_v28 }
  0x31   :  { %v123_v63 = vadd.f32 %v122_v53, %v121_v57  ;;  %v214_v12 = vadd.f32 %v213_v3, %v212_v6  ;;  %v233_v53 = vsel %vm74_vm1, %v175_v44, 0.0  ;;  %v235_v57 = vsel %vm74_vm1, %v176_v48, 0.0 }
  0x32   :  { %v241_v4 = vsel %vm74_vm1, %v179_v61, 0.0 }
  0x33   :  { %v125_v5 = vadd.f32 %v124_v59, %v123_v63  ;;  %v216_v18 = vadd.f32 %v215_v9, %v214_v12 }
  0x35   :  { %v127_v11 = vadd.f32 %v126_v1, %v125_v5  ;;  %v218_v24 = vadd.f32 %v217_v15, %v216_v18  ;;  %v239_v1 = vsel %vm74_vm1, %v178_v56, 0.0 }
  0x37   :  { %v129_v17 = vadd.f32 %v128_v7, %v127_v11  ;;  %v220_v30 = vadd.f32 %v219_v21, %v218_v24 }
  0x39   :  { %v131_v23 = vadd.f32 %v130_v13, %v129_v17  ;;  %v222_v35 = vadd.f32 %v221_v27, %v220_v30 }
  0x3b   :  { %v133_v29 = vadd.f32 %v132_v19, %v131_v23  ;;  %v224_v39 = vadd.f32 %v223_v33, %v222_v35 }
  0x3d   :  { %v135_v34 = vadd.f32 %v134_v25, %v133_v29  ;;  %v226_v43 = vadd.f32 %v225_v37, %v224_v39 }
  0x3f   :  { %v137_v38 = vadd.f32 %v136_v31, %v135_v34  ;;  %v228_v47 = vadd.f32 %v227_v41, %v226_v43 }
  0x41   :  { %v138_v42 = vrot.slane %v137_v38, 4  ;;  %v230_v51 = vadd.f32 %v229_v45, %v228_v47 }
  0x43   :  { %v139_v46 = vadd.f32 %v138_v42, %v137_v38  ;;  %v232_v55 = vadd.f32 %v231_v49, %v230_v51 }
  0x45   :  { %v140_v50 = vrot.slane %v139_v46, 2  ;;  %v234_v59 = vadd.f32 %v233_v53, %v232_v55 }
  0x47   :  { %v141_v54 = vadd.f32 %v140_v50, %v139_v46  ;;  %v236_v0 = vadd.f32 %v235_v57, %v234_v59 }
  0x49   :  { %v142_v58 = vrot.slane %v141_v54, 1  ;;  %v238_v3 = vadd.f32 %v237_v62, %v236_v0 }
  0x4b   :  { %v143_v63 = vadd.f32 %v142_v58, %v141_v54  ;;  %v240_v5 = vadd.f32 %v239_v1, %v238_v3 }
  0x4d   :  { %v144_v2 = vadd.f32 %v143_v63, %v73_v60 }
  0x4f   :  { %146 = vst.msk [vmem:[#allocation2] sm:$0x1] %vm38_vm0, %v144_v2 }
  0x50   :  { %299 = shalt.err (!%p296_p4)
}
  0x51   :  { %s300_s22 = scalar_lea.hbm %s543_s1, 16 }
  0x52   :  { %p301_p5 = scmp.ne.s32.totalorder %s543_s1, %s300_s22  ;;  %p304_p6 = scmp.lt.u32.totalorder %s300_s22, %s543_s1 }
  0x54   :  { %p306_p7 = pnand %p304_p6, %p301_p5 }
  0x56   :  { %309 = shalt.err (!%p306_p7)
}
  0x57   :  { %260 = dma.vmem_to_hbm [thread:$0]  %s258_s17, 16, %s543_s1, [#allocation3]   ;;  %v242_v6 = vadd.f32 %v241_v4, %v240_v5  ;;  %v147_v12 = vld [vmem:[#allocation4] sm:$0x1] }
  0x58   :  { %s338_s29 = smov [#allocation4]  }
  0x59   :  { %v243_v7 = vrot.slane %v242_v6, 4  ;;  %s267_s30 = sshll.u32 %s338_s29, 4  ;;  %s268_s30 = int_to_ptr.vmem [resolvable:$true] %s267_s30 }
  0x5a   :  { %s310_s3 = scalar_lea.vmem %s268_s30, 16  ;;  %s314_s4 = scalar_lea.vmem %s268_s30, 32 }
  0x5b   :  { %v244_v8 = vadd.f32 %v243_v7, %v242_v6  ;;  %p311_p8 = scmp.ne.s32.totalorder %s268_s30, %s310_s3  ;;  %p315_p9 = scmp.lt.s32.totalorder %s268_s30, %s268_s30 }
  0x5c   :  { %p316_p10 = scmp.lt.s32.totalorder %s314_s4, %s310_s3 }
  0x5d   :  { %v245_v9 = vrot.slane %v244_v8, 2 }
  0x5e   :  { %p317_p11 = por %p316_p10, %p315_p9 }
  0x5f   :  { %v246_v10 = vadd.f32 %v245_v9, %v244_v8 }
  0x60   :  { %p318_p12 = pnand %p317_p11, %p311_p8 }
  0x61   :  { %v247_v11 = vrot.slane %v246_v10, 1 }
  0x63   :  { %v248_v13 = vadd.f32 %v247_v11, %v246_v10 }
  0x65   :  { %v249_v14 = vadd.f32 %v248_v13, %v147_v12 }
  0x67   :  { %250 = vst.msk [vmem:[#allocation4] sm:$0x1] %vm38_vm0, %v249_v14 }
  0x68   :  { %321 = shalt.err (!%p318_p12)
}
  0x69   :  { %s322_s6 = scalar_lea.hbm %s544_s2, 16 }
  0x6a   :  { %p323_p13 = scmp.ne.s32.totalorder %s544_s2, %s322_s6  ;;  %p326_p0 = scmp.lt.u32.totalorder %s322_s6, %s544_s2 }
  0x6c   :  { %p328_p1 = pnand %p326_p0, %p323_p13 }
  0x6e   :  { %331 = shalt.err (!%p328_p1)
}
  0x6f   :  { %270 = dma.vmem_to_hbm [thread:$0]  %s268_s30, 16, %s544_s2, [#allocation5]  }
  0x70   :  { %332 = dma.done.wait [#allocation3], 16  }
  0x71   :  { %333 = vsyncadd [#allocation3], 4294967280 }
  0x72   :  { %334 = dma.done.wait [#allocation5], 16  }
  0x73   :  { %335 = vsyncadd [#allocation5], 4294967280 }
  0x74   :  { %277 = vsyncpa [#allocation3], 1 }
  0x75   :  { %278 = vsyncpa [#allocation5], 1 }

</bundles_post_ra>
